<compile_context>
chip_gen: v6e
topology: v6e:2x2x1
jax: 0.10.0
libtpu: 0.0.40
codegen_flags: <defaults>
</compile_context>

<pallas_src>
import jax
import jax.numpy as jnp
from jax.experimental import pallas as pl
from jax.experimental.pallas import tpu as pltpu

_MAX_TB = 2048  # batch-tile upper bound (mem-bound kernel: bigger tiles amortize step overhead)


def _round_up(n, m):
    return ((n + m - 1) // m) * m


def _cdiv(a, b):
    return -(-a // b)


def autoencoder_kernel(x_ref,
                       w0, b0, w1, b1, w2, b2, w3, b3, w4, b4, w5, b5,
                       out_ref):
    """One batch tile of the autoencoder forward.

    Storage dtype may be bf16; all arithmetic is done in f32 (MXU accumulation via
    preferred_element_type, ReLU/sigmoid in f32) so the kernel is safe on v5e as well.
    """
    def lin(h, w_ref, b_ref):
        return (jnp.dot(h, w_ref[...].astype(jnp.float32),
                        preferred_element_type=jnp.float32)
                + b_ref[...].astype(jnp.float32))

    h = x_ref[...].astype(jnp.float32)
    # encoder: Linear + ReLU x3
    h = jnp.maximum(lin(h, w0, b0), 0.0)   # dim -> 32
    h = jnp.maximum(lin(h, w1, b1), 0.0)   # 32  -> 16
    h = jnp.maximum(lin(h, w2, b2), 0.0)   # 16  -> 8
    # decoder: Linear + ReLU x2, Linear + Sigmoid
    h = jnp.maximum(lin(h, w3, b3), 0.0)   # 8   -> 16
    h = jnp.maximum(lin(h, w4, b4), 0.0)   # 16  -> 32
    z = lin(h, w5, b5)                     # 32  -> dim
    out_ref[...] = jax.nn.sigmoid(z).astype(out_ref.dtype)
    # num_classes == 1 => the fc_layers / Softmax branch is never executed.


def make_params(key, dim=27):
    """Deterministic PyTorch-style init: U(-1/sqrt(fan_in), 1/sqrt(fan_in)).

    Weights stored as (in_features, out_features); biases as (1, out_features).
    """
    sizes = [dim, 32, 16, 8, 16, 32, dim]
    params = []
    for i in range(6):
        fan_in, fan_out = sizes[i], sizes[i + 1]
        key, kw, kb = jax.random.split(key, 3)
        bound = 1.0 / (fan_in ** 0.5)
        w = jax.random.uniform(kw, (fan_in, fan_out), jnp.float32, -bound, bound)
        b = jax.random.uniform(kb, (1, fan_out), jnp.float32, -bound, bound)
        params += [w, b]
    return params


def prepare_params(params, dtype=jnp.float32):
    """One-time parameter prep (storage-dtype cast). Call once outside the forward so the
    per-call jitted graph around the pallas_call stays free of tiny prep kernels."""
    return [jnp.asarray(p, dtype) for p in params]


def _pick_batch_tile(B):
    B8 = _round_up(B, 8)
    if B8 <= 8:
        return B8  # single tiny tile; splitting would only add padded rows
    # >= 2 grid steps so ("parallel",) can use both v7x TensorCores; near-even split keeps
    # tail-tile waste below n_steps*8 rows while capping tiles at _MAX_TB rows.
    n_steps = max(2, _cdiv(B8, _MAX_TB))
    return _round_up(_cdiv(B8, n_steps), 8)


def autoencoder_forward(x, params, *, tb=None):
    B, dim = x.shape
    assert params[0].shape[0] == dim

    tb = _pick_batch_tile(B) if tb is None else _round_up(tb, 8)
    B_pad = _round_up(B, tb)
    x_p = x if B_pad == B else jnp.pad(x, ((0, B_pad - B), (0, 0)))

    # x/out tiled (tb, dim): dim keeps its true width (27 == full array dim is a legal
    # block width), so there is no lane padding and no output slice in the lane dim.
    io_spec = pl.BlockSpec((tb, dim), lambda i: (i, 0))
    # weights/biases: full-array blocks with constant index_map -> resident across steps.
    param_specs = [pl.BlockSpec(p.shape, lambda i: (0, 0)) for p in params]

    out = pl.pallas_call(
        autoencoder_kernel,
        out_shape=jax.ShapeDtypeStruct((B_pad, dim), x.dtype),
        grid=(B_pad // tb,),
        in_specs=[io_spec] + param_specs,
        out_specs=io_spec,
        compiler_params=pltpu.CompilerParams(
            dimension_semantics=("parallel",)),
    )(x_p, *params)
    return out if B_pad == B else out[:B]


def _reference_forward(x, params):
    """Pure-JAX f32 reference for correctness checking."""
    def lin(h, i):
        return h @ params[2 * i] + params[2 * i + 1]
    h = jax.nn.relu(lin(x, 0))
    h = jax.nn.relu(lin(h, 1))
    h = jax.nn.relu(lin(h, 2))
    h = jax.nn.relu(lin(h, 3))
    h = jax.nn.relu(lin(h, 4))
    return jax.nn.sigmoid(lin(h, 5))


if __name__ == "__main__":
    DIM = 27
    key = jax.random.PRNGKey(0)
    kx, kp = jax.random.split(key)
    params = make_params(kp, dim=DIM)

    # 1) tiny batch, f32 (exact semantics of the PyTorch module)
    x_small = jax.random.uniform(kx, (8, DIM), jnp.float32)
    out_small = jax.block_until_ready(autoencoder_forward(x_small, params))
    ref_small = _reference_forward(x_small, params)
    assert out_small.shape == (8, DIM)
    assert jnp.allclose(out_small, ref_small, atol=1e-5, rtol=1e-5)

    # 2) moderate batch, f32: exercises the multi-step grid + row-tail padding path
    x_med = jax.random.uniform(jax.random.fold_in(kx, 1), (300, DIM), jnp.float32)
    out_med = jax.block_until_ready(autoencoder_forward(x_med, params))
    ref_med = _reference_forward(x_med, params)
    assert out_med.shape == (300, DIM)
    assert jnp.allclose(out_med, ref_med, atol=1e-5, rtol=1e-5)

    # 3) bf16 storage (HBM-traffic win on v6e/v7x; in-kernel compute stays f32)
    params_bf16 = prepare_params(params, jnp.bfloat16)
    out_bf16 = jax.block_until_ready(
        autoencoder_forward(x_med.astype(jnp.bfloat16), params_bf16))
    assert out_bf16.dtype == jnp.bfloat16
    assert jnp.allclose(out_bf16.astype(jnp.float32), ref_med, atol=3e-2)

    print("KERNEL_OK")
</pallas_src>

<mosaic_0001>
module attributes {stable_mosaic.version = 11 : i64} {
  func.func @autoencoder_kernel(%arg0: i32, %arg1: memref<8x27xf32, #tpu.memory_space<vmem>>, %arg2: memref<27x32xf32, #tpu.memory_space<vmem>>, %arg3: memref<1x32xf32, #tpu.memory_space<vmem>>, %arg4: memref<32x16xf32, #tpu.memory_space<vmem>>, %arg5: memref<1x16xf32, #tpu.memory_space<vmem>>, %arg6: memref<16x8xf32, #tpu.memory_space<vmem>>, %arg7: memref<1x8xf32, #tpu.memory_space<vmem>>, %arg8: memref<8x16xf32, #tpu.memory_space<vmem>>, %arg9: memref<1x16xf32, #tpu.memory_space<vmem>>, %arg10: memref<16x32xf32, #tpu.memory_space<vmem>>, %arg11: memref<1x32xf32, #tpu.memory_space<vmem>>, %arg12: memref<32x27xf32, #tpu.memory_space<vmem>>, %arg13: memref<1x27xf32, #tpu.memory_space<vmem>>, %arg14: memref<8x27xf32, #tpu.memory_space<vmem>>) attributes {dimension_semantics = [#tpu.dimension_semantics<parallel>], iteration_bounds = array<i64: 1>, scalar_prefetch = 0 : i64, scratch_operands = 0 : i64, tpu.core_type = #tpu.core_type<tc>, window_params = [{transform_indices = @transform_0, window_bounds = array<i64: 8, 27>}, {pipeline_mode = #tpu.pipeline_mode<synchronous>, transform_indices = @transform_1, window_bounds = array<i64: 27, 32>}, {pipeline_mode = #tpu.pipeline_mode<synchronous>, transform_indices = @transform_2, window_bounds = array<i64: 1, 32>}, {pipeline_mode = #tpu.pipeline_mode<synchronous>, transform_indices = @transform_3, window_bounds = array<i64: 32, 16>}, {pipeline_mode = #tpu.pipeline_mode<synchronous>, transform_indices = @transform_4, window_bounds = array<i64: 1, 16>}, {pipeline_mode = #tpu.pipeline_mode<synchronous>, transform_indices = @transform_5, window_bounds = array<i64: 16, 8>}, {pipeline_mode = #tpu.pipeline_mode<synchronous>, transform_indices = @transform_6, window_bounds = array<i64: 1, 8>}, {pipeline_mode = #tpu.pipeline_mode<synchronous>, transform_indices = @transform_7, window_bounds = array<i64: 8, 16>}, {pipeline_mode = #tpu.pipeline_mode<synchronous>, transform_indices = @transform_8, window_bounds = array<i64: 1, 16>}, {pipeline_mode = #tpu.pipeline_mode<synchronous>, transform_indices = @transform_9, window_bounds = array<i64: 16, 32>}, {pipeline_mode = #tpu.pipeline_mode<synchronous>, transform_indices = @transform_10, window_bounds = array<i64: 1, 32>}, {pipeline_mode = #tpu.pipeline_mode<synchronous>, transform_indices = @transform_11, window_bounds = array<i64: 32, 27>}, {pipeline_mode = #tpu.pipeline_mode<synchronous>, transform_indices = @transform_12, window_bounds = array<i64: 1, 27>}, {transform_indices = @transform_13, window_bounds = array<i64: 8, 27>}]} {
    %c0 = arith.constant 0 : index
    %c0_0 = arith.constant 0 : index
    %0 = vector.load %arg1[%c0, %c0_0] : memref<8x27xf32, #tpu.memory_space<vmem>>, vector<8x27xf32>
    %c0_1 = arith.constant 0 : index
    %c0_2 = arith.constant 0 : index
    %1 = vector.load %arg2[%c0_1, %c0_2] : memref<27x32xf32, #tpu.memory_space<vmem>>, vector<27x32xf32>
    %cst = arith.constant dense<0.000000e+00> : vector<8x32xf32>
    %2 = tpu.matmul %0, %1, %cst {dimension_numbers = #tpu.dot_dimension_numbers<[1], [0], [0], [1], [0, 0, 1, 1], [], []>} : vector<8x27xf32>, vector<27x32xf32>, vector<8x32xf32> -> vector<8x32xf32>
    %c0_3 = arith.constant 0 : index
    %c0_4 = arith.constant 0 : index
    %3 = vector.load %arg3[%c0_3, %c0_4] : memref<1x32xf32, #tpu.memory_space<vmem>>, vector<1x32xf32>
    %4 = vector.broadcast %3 : vector<1x32xf32> to vector<8x32xf32>
    %5 = arith.addf %2, %4 : vector<8x32xf32>
    %cst_5 = arith.constant 0.000000e+00 : f32
    %6 = vector.broadcast %cst_5 : f32 to vector<8x32xf32>
    %7 = arith.maximumf %5, %6 : vector<8x32xf32>
    %c0_6 = arith.constant 0 : index
    %c0_7 = arith.constant 0 : index
    %8 = vector.load %arg4[%c0_6, %c0_7] : memref<32x16xf32, #tpu.memory_space<vmem>>, vector<32x16xf32>
    %cst_8 = arith.constant dense<0.000000e+00> : vector<8x16xf32>
    %9 = tpu.matmul %7, %8, %cst_8 {dimension_numbers = #tpu.dot_dimension_numbers<[1], [0], [0], [1], [0, 0, 1, 1], [], []>} : vector<8x32xf32>, vector<32x16xf32>, vector<8x16xf32> -> vector<8x16xf32>
    %c0_9 = arith.constant 0 : index
    %c0_10 = arith.constant 0 : index
    %10 = vector.load %arg5[%c0_9, %c0_10] : memref<1x16xf32, #tpu.memory_space<vmem>>, vector<1x16xf32>
    %11 = vector.broadcast %10 : vector<1x16xf32> to vector<8x16xf32>
    %12 = arith.addf %9, %11 : vector<8x16xf32>
    %cst_11 = arith.constant 0.000000e+00 : f32
    %13 = vector.broadcast %cst_11 : f32 to vector<8x16xf32>
    %14 = arith.maximumf %12, %13 : vector<8x16xf32>
    %c0_12 = arith.constant 0 : index
    %c0_13 = arith.constant 0 : index
    %15 = vector.load %arg6[%c0_12, %c0_13] : memref<16x8xf32, #tpu.memory_space<vmem>>, vector<16x8xf32>
    %cst_14 = arith.constant dense<0.000000e+00> : vector<8x8xf32>
    %16 = tpu.matmul %14, %15, %cst_14 {dimension_numbers = #tpu.dot_dimension_numbers<[1], [0], [0], [1], [0, 0, 1, 1], [], []>} : vector<8x16xf32>, vector<16x8xf32>, vector<8x8xf32> -> vector<8x8xf32>
    %c0_15 = arith.constant 0 : index
    %c0_16 = arith.constant 0 : index
    %17 = vector.load %arg7[%c0_15, %c0_16] : memref<1x8xf32, #tpu.memory_space<vmem>>, vector<1x8xf32>
    %18 = vector.broadcast %17 : vector<1x8xf32> to vector<8x8xf32>
    %19 = arith.addf %16, %18 : vector<8x8xf32>
    %cst_17 = arith.constant 0.000000e+00 : f32
    %20 = vector.broadcast %cst_17 : f32 to vector<8x8xf32>
    %21 = arith.maximumf %19, %20 : vector<8x8xf32>
    %c0_18 = arith.constant 0 : index
    %c0_19 = arith.constant 0 : index
    %22 = vector.load %arg8[%c0_18, %c0_19] : memref<8x16xf32, #tpu.memory_space<vmem>>, vector<8x16xf32>
    %cst_20 = arith.constant dense<0.000000e+00> : vector<8x16xf32>
    %23 = tpu.matmul %21, %22, %cst_20 {dimension_numbers = #tpu.dot_dimension_numbers<[1], [0], [0], [1], [0, 0, 1, 1], [], []>} : vector<8x8xf32>, vector<8x16xf32>, vector<8x16xf32> -> vector<8x16xf32>
    %c0_21 = arith.constant 0 : index
    %c0_22 = arith.constant 0 : index
    %24 = vector.load %arg9[%c0_21, %c0_22] : memref<1x16xf32, #tpu.memory_space<vmem>>, vector<1x16xf32>
    %25 = vector.broadcast %24 : vector<1x16xf32> to vector<8x16xf32>
    %26 = arith.addf %23, %25 : vector<8x16xf32>
    %cst_23 = arith.constant 0.000000e+00 : f32
    %27 = vector.broadcast %cst_23 : f32 to vector<8x16xf32>
    %28 = arith.maximumf %26, %27 : vector<8x16xf32>
    %c0_24 = arith.constant 0 : index
    %c0_25 = arith.constant 0 : index
    %29 = vector.load %arg10[%c0_24, %c0_25] : memref<16x32xf32, #tpu.memory_space<vmem>>, vector<16x32xf32>
    %cst_26 = arith.constant dense<0.000000e+00> : vector<8x32xf32>
    %30 = tpu.matmul %28, %29, %cst_26 {dimension_numbers = #tpu.dot_dimension_numbers<[1], [0], [0], [1], [0, 0, 1, 1], [], []>} : vector<8x16xf32>, vector<16x32xf32>, vector<8x32xf32> -> vector<8x32xf32>
    %c0_27 = arith.constant 0 : index
    %c0_28 = arith.constant 0 : index
    %31 = vector.load %arg11[%c0_27, %c0_28] : memref<1x32xf32, #tpu.memory_space<vmem>>, vector<1x32xf32>
    %32 = vector.broadcast %31 : vector<1x32xf32> to vector<8x32xf32>
    %33 = arith.addf %30, %32 : vector<8x32xf32>
    %cst_29 = arith.constant 0.000000e+00 : f32
    %34 = vector.broadcast %cst_29 : f32 to vector<8x32xf32>
    %35 = arith.maximumf %33, %34 : vector<8x32xf32>
    %c0_30 = arith.constant 0 : index
    %c0_31 = arith.constant 0 : index
    %36 = vector.load %arg12[%c0_30, %c0_31] : memref<32x27xf32, #tpu.memory_space<vmem>>, vector<32x27xf32>
    %cst_32 = arith.constant dense<0.000000e+00> : vector<8x27xf32>
    %37 = tpu.matmul %35, %36, %cst_32 {dimension_numbers = #tpu.dot_dimension_numbers<[1], [0], [0], [1], [0, 0, 1, 1], [], []>} : vector<8x32xf32>, vector<32x27xf32>, vector<8x27xf32> -> vector<8x27xf32>
    %c0_33 = arith.constant 0 : index
    %c0_34 = arith.constant 0 : index
    %38 = vector.load %arg13[%c0_33, %c0_34] : memref<1x27xf32, #tpu.memory_space<vmem>>, vector<1x27xf32>
    %39 = vector.broadcast %38 : vector<1x27xf32> to vector<8x27xf32>
    %40 = arith.addf %37, %39 : vector<8x27xf32>
    %41 = arith.negf %40 : vector<8x27xf32>
    %42 = math.exp %41 : vector<8x27xf32>
    %cst_35 = arith.constant 1.000000e+00 : f32
    %43 = vector.broadcast %cst_35 : f32 to vector<8x27xf32>
    %44 = arith.addf %43, %42 : vector<8x27xf32>
    %45 = arith.divf %43, %44 : vector<8x27xf32>
    %c0_36 = arith.constant 0 : index
    %c0_37 = arith.constant 0 : index
    %46 = vector.load %arg14[%c0_36, %c0_37] : memref<8x27xf32, #tpu.memory_space<vmem>>, vector<8x27xf32>
    tpu.vector_store %arg14[%c0_36, %c0_37], %45 {strides = array<i32>} : memref<8x27xf32, #tpu.memory_space<vmem>>, vector<8x27xf32>,
    return
  }
  func.func @transform_0(%arg0: i32) -> (i32, i32) {
    %c0_i32 = arith.constant 0 : i32
    %c0_i32_0 = arith.constant 0 : i32
    return %arg0, %c0_i32 : i32, i32
  }
  func.func @transform_1(%arg0: i32) -> (i32, i32) {
    %c0_i32 = arith.constant 0 : i32
    %c0_i32_0 = arith.constant 0 : i32
    %c0_i32_1 = arith.constant 0 : i32
    return %c0_i32, %c0_i32_0 : i32, i32
  }
  func.func @transform_2(%arg0: i32) -> (i32, i32) {
    %c0_i32 = arith.constant 0 : i32
    %c0_i32_0 = arith.constant 0 : i32
    %c0_i32_1 = arith.constant 0 : i32
    return %c0_i32, %c0_i32_0 : i32, i32
  }
  func.func @transform_3(%arg0: i32) -> (i32, i32) {
    %c0_i32 = arith.constant 0 : i32
    %c0_i32_0 = arith.constant 0 : i32
    %c0_i32_1 = arith.constant 0 : i32
    return %c0_i32, %c0_i32_0 : i32, i32
  }
  func.func @transform_4(%arg0: i32) -> (i32, i32) {
    %c0_i32 = arith.constant 0 : i32
    %c0_i32_0 = arith.constant 0 : i32
    %c0_i32_1 = arith.constant 0 : i32
    return %c0_i32, %c0_i32_0 : i32, i32
  }
  func.func @transform_5(%arg0: i32) -> (i32, i32) {
    %c0_i32 = arith.constant 0 : i32
    %c0_i32_0 = arith.constant 0 : i32
    %c0_i32_1 = arith.constant 0 : i32
    return %c0_i32, %c0_i32_0 : i32, i32
  }
  func.func @transform_6(%arg0: i32) -> (i32, i32) {
    %c0_i32 = arith.constant 0 : i32
    %c0_i32_0 = arith.constant 0 : i32
    %c0_i32_1 = arith.constant 0 : i32
    return %c0_i32, %c0_i32_0 : i32, i32
  }
  func.func @transform_7(%arg0: i32) -> (i32, i32) {
    %c0_i32 = arith.constant 0 : i32
    %c0_i32_0 = arith.constant 0 : i32
    %c0_i32_1 = arith.constant 0 : i32
    return %c0_i32, %c0_i32_0 : i32, i32
  }
  func.func @transform_8(%arg0: i32) -> (i32, i32) {
    %c0_i32 = arith.constant 0 : i32
    %c0_i32_0 = arith.constant 0 : i32
    %c0_i32_1 = arith.constant 0 : i32
    return %c0_i32, %c0_i32_0 : i32, i32
  }
  func.func @transform_9(%arg0: i32) -> (i32, i32) {
    %c0_i32 = arith.constant 0 : i32
    %c0_i32_0 = arith.constant 0 : i32
    %c0_i32_1 = arith.constant 0 : i32
    return %c0_i32, %c0_i32_0 : i32, i32
  }
  func.func @transform_10(%arg0: i32) -> (i32, i32) {
    %c0_i32 = arith.constant 0 : i32
    %c0_i32_0 = arith.constant 0 : i32
    %c0_i32_1 = arith.constant 0 : i32
    return %c0_i32, %c0_i32_0 : i32, i32
  }
  func.func @transform_11(%arg0: i32) -> (i32, i32) {
    %c0_i32 = arith.constant 0 : i32
    %c0_i32_0 = arith.constant 0 : i32
    %c0_i32_1 = arith.constant 0 : i32
    return %c0_i32, %c0_i32_0 : i32, i32
  }
  func.func @transform_12(%arg0: i32) -> (i32, i32) {
    %c0_i32 = arith.constant 0 : i32
    %c0_i32_0 = arith.constant 0 : i32
    %c0_i32_1 = arith.constant 0 : i32
    return %c0_i32, %c0_i32_0 : i32, i32
  }
  func.func @transform_13(%arg0: i32) -> (i32, i32) {
    %c0_i32 = arith.constant 0 : i32
    %c0_i32_0 = arith.constant 0 : i32
    return %arg0, %c0_i32 : i32, i32
  }
}

</mosaic_0001>

<bundles_post_ra>
// kernel: tpu_custom_call.1
= control target key start
LH: loop header
LB: loop body
LE: loop exit
PB: predicated region body
PF: predicated region fallthrough
CT: control target
= control target key end

     0   :  { %18 = vsyncpa [#allocation3], 0  ;;  %s985_s0 = inlined_call_operand.hbm [shape: f32[8,27], index: 0, kind: input, shape index: {}]   ;;  %s986_s1 = inlined_call_operand.vmem [shape: f32[27,32], index: 1, kind: input, shape index: {}]   ;;  %s987_s2 = inlined_call_operand.vmem [shape: f32[1,32], index: 2, kind: input, shape index: {}]   ;;  %s988_s3 = inlined_call_operand.vmem [shape: f32[32,16], index: 3, kind: input, shape index: {}]   ;;  %s989_s4 = inlined_call_operand.hbm [shape: f32[1,16], index: 4, kind: input, shape index: {}]   ;;  %s990_s5 = inlined_call_operand.vmem [shape: f32[16,8], index: 5, kind: input, shape index: {}]   ;;  %s991_s6 = inlined_call_operand.vmem [shape: f32[1,8], index: 6, kind: input, shape index: {}]   ;;  %s992_s7 = inlined_call_operand.hbm [shape: f32[8,16], index: 7, kind: input, shape index: {}]   ;;  %s993_s8 = inlined_call_operand.vmem [shape: f32[1,16], index: 8, kind: input, shape index: {}]   ;;  %s994_s9 = inlined_call_operand.vmem [shape: f32[16,32], index: 9, kind: input, shape index: {}]   ;;  %s995_s10 = inlined_call_operand.vmem [shape: f32[1,32], index: 10, kind: input, shape index: {}]   ;;  %s996_s11 = inlined_call_operand.vmem [shape: f32[32,27], index: 11, kind: input, shape index: {}]   ;;  %s997_s12 = inlined_call_operand.vmem [shape: f32[1,27], index: 12, kind: input, shape index: {}]   ;;  %s998_s13 = inlined_call_operand.hbm [shape: f32[8,27], index: 13, kind: output, shape index: {}]  }
   0x1   :  { %19 = vsyncpa [#allocation6], 0 }
   0x2   :  { %20 = vsyncpa [#allocation4], 0  ;;  %s799_s25 = smov [#allocation5]   ;;  %s800_s27 = smov [#allocation2]  }
   0x3   :  { %s43_s26 = sshll.u32 %s799_s25, 4  ;;  %s27_s28 = sshll.u32 %s800_s27, 4  ;;  %s44_s26 = int_to_ptr.vmem [resolvable:$true] %s43_s26  ;;  %s28_s28 = int_to_ptr.vmem [resolvable:$true] %s27_s28 }
   0x4   :  { %s721_s29 = scalar_lea.vmem %s44_s26, 16  ;;  %s725_s30 = scalar_lea.vmem %s44_s26, 32 }
   0x5   :  { %p722_p0 = scmp.ne.s32.totalorder %s44_s26, %s721_s29  ;;  %p726_p1 = scmp.lt.s32.totalorder %s44_s26, %s44_s26 }
   0x6   :  { %p727_p2 = scmp.lt.s32.totalorder %s725_s30, %s721_s29 }
   0x8   :  { %p728_p3 = por %p727_p2, %p726_p1 }
   0xa   :  { %p729_p4 = pnand %p728_p3, %p722_p0 }
   0xc   :  { %732 = shalt.err (!%p729_p4)
}
   0xd   :  { %46 = dma.hbm_to_vmem [thread:$0]  %s989_s4, 16, %s44_s26, [#allocation6]  }
   0xe   :  { %s741_s16 = scalar_lea.vmem %s28_s28, 128  ;;  %p746_p6 = scmp.lt.s32.totalorder %s28_s28, %s28_s28 }
   0xf   :  { %p742_p5 = scmp.ne.s32.totalorder %s28_s28, %s741_s16  ;;  %p747_p7 = scmp.lt.s32.totalorder %s741_s16, %s741_s16 }
  0x11   :  { %p748_p8 = por %p747_p7, %p746_p6 }
  0x13   :  { %p749_p9 = pnand %p748_p8, %p742_p5 }
  0x15   :  { %752 = shalt.err (!%p749_p9)
}
  0x16   :  { %30 = dma.hbm_to_vmem [thread:$0]  %s985_s0, 128, %s28_s28, [#allocation3]  }
  0x17   :  { %s801_s19 = smov [#allocation7]  }
  0x18   :  { %s57_s20 = sshll.u32 %s801_s19, 4  ;;  %s58_s20 = int_to_ptr.vmem [resolvable:$true] %s57_s20 }
  0x19   :  { %s761_s21 = scalar_lea.vmem %s58_s20, 128  ;;  %p766_p11 = scmp.lt.s32.totalorder %s58_s20, %s58_s20 }
  0x1a   :  { %p762_p10 = scmp.ne.s32.totalorder %s58_s20, %s761_s21  ;;  %p767_p12 = scmp.lt.s32.totalorder %s761_s21, %s761_s21 }
  0x1c   :  { %p768_p13 = por %p767_p12, %p766_p11 }
  0x1e   :  { %p769_p0 = pnand %p768_p13, %p762_p10 }
  0x20   :  { %772 = shalt.err (!%p769_p0)
}
  0x21   :  { %60 = dma.hbm_to_vmem [thread:$0]  %s992_s7, 128, %s58_s20, [#allocation6]  }
  0x22   :  { %793 = dma.done.wait [#allocation3], 128  }
  0x23   :  { %794 = vsyncadd [#allocation3], 4294967168 }
  0x24   :  { %795 = dma.done.wait [#allocation6], 144  }
  0x25   :  { %796 = vsyncadd [#allocation6], 4294967152  ;;  %v802_v0 = vmov 0.0   ;;  %vm803_vm0 = vmmov 0   ;;  %vm96_vm1 = vcmask 1042432   ;;  %v83_v2 = vld [vmem:[%s986_s1 + $0x10] sm:$0xff] }
  0x26   :  { %651 = vmatprep.subr.mxu0 %v802_v0  ;;  %659 = vmatprep.mubr.msk.f32.mxu0 %vm803_vm0, %v802_v0  ;;  %v84_v1 = vld [vmem:[%s986_s1 + $0x18] sm:$0x7]  ;;  %v82_v4 = vld [vmem:[%s986_s1 + $0x8] sm:$0xff]  ;;  %v81_v5 = vld [vmem:[%s986_s1] sm:$0xff]  ;;  %vm92_vm2 = vcmask 220160   ;;  %vm182_vm3 = vcmask 261120  }
  0x27   :  { %662 = vmatprep.subr.mxu1 %v802_v0  ;;  %670 = vmatprep.mubr.msk.f32.mxu1 %vm803_vm0, %v802_v0  ;;  %v174_v3 = vld [vmem:[%s988_s3 + $0x18] sm:$0xff]  ;;  %v80_v6 = vld [vmem:[#allocation2] sm:$0xff]  ;;  %v173_v7 = vld [vmem:[%s988_s3 + $0x10] sm:$0xff]  ;;  %vm266_vm4 = vcmask 130048   ;;  %vm349_vm5 = vcmask 64512  }
  0x28   :  { %652 = vmatpush3.msk.msra.mxu0 %vm96_vm1, %v84_v1  ;;  %663 = vmatpush3.msra.mxu1 %v174_v3  ;;  %v172_v8 = vld [vmem:[%s988_s3 + $0x8] sm:$0xff]  ;;  %v171_v9 = vld [vmem:[%s988_s3] sm:$0xff]  ;;  %v510_v30 = vld [vmem:[%s996_s11 + $0x18] sm:$0xff] }
  0x29   :  { %653 = vmatprep.subr.mxu0 %v802_v0  ;;  %664 = vmatprep.subr.mxu1 %v802_v0  ;;  %v614_v10 = vld [vmem:[%s987_s2] ss:$0 sm:$0xff]  ;;  %v258_v15 = vld [vmem:[%s990_s5 + $0x8] sm:$0xff]  ;;  %v509_v36 = vld [vmem:[%s996_s11 + $0x10] sm:$0xff] }
  0x2a   :  { %654 = vmatpush3.msra.mxu0 %v83_v2  ;;  %665 = vmatpush3.msra.mxu1 %v173_v7  ;;  %v257_v16 = vld [vmem:[%s990_s5] sm:$0xff]  ;;  %v617_v17 = vld [vmem:[#allocation5] ss:$0 sm:$0xff]  ;;  %v341_v22 = vld [vmem:[#allocation7] sm:$0xff] }
  0x2b   :  { %655 = vmatprep.subr.mxu0 %v802_v0  ;;  %666 = vmatprep.subr.mxu1 %v802_v0  ;;  %v619_v23 = vld [vmem:[%s991_s6] ss:$0 sm:$0xff]  ;;  %v425_v28 = vld [vmem:[%s994_s9 + $0x8] sm:$0xff] }
  0x2c   :  { %656 = vmatpush3.msra.mxu0 %v82_v4  ;;  %667 = vmatpush3.msra.mxu1 %v172_v8  ;;  %v424_v29 = vld [vmem:[%s994_s9] sm:$0xff]  ;;  %v508_v37 = vld [vmem:[%s996_s11 + $0x8] sm:$0xff] }
  0x2d   :  { %657 = vmatprep.subr.mxu0 %v802_v0  ;;  %668 = vmatprep.subr.mxu1 %v802_v0  ;;  %v621_v31 = vld [vmem:[%s993_s8] ss:$0 sm:$0xff] }
  0x2e   :  { %658 = vmatpush3.msra.mxu0 %v81_v5  ;;  %669 = vmatpush3.msra.mxu1 %v171_v9  ;;  %v507_v38 = vld [vmem:[%s996_s11] sm:$0xff]  ;;  %s804_s11 = smov [#allocation8]  }
  0x2f   :  { %660 = vmatmul.mubr.msk.f32.vlgmr.msra.gmra.mxu0 %vm92_vm2, %v80_v6  ;;  %673 = vmatprep.subr.mxu0 %v802_v0  ;;  %v623_v39 = vld [vmem:[%s995_s10] ss:$0 sm:$0xff]  ;;  %s604_s10 = sshll.u32 %s804_s11, 4  ;;  %s605_s10 = int_to_ptr.vmem [resolvable:$true] %s604_s10 }
  0x30   :  { %677 = vmatprep.mubr.msk.f32.mxu0 %vm803_vm0, %v802_v0  ;;  %680 = vmatprep.subr.mxu1 %v802_v0  ;;  %v625_v44 = vld [vmem:[%s997_s12] ss:$0 sm:$0xff]  ;;  %s773_s18 = scalar_lea.vmem %s605_s10, 128  ;;  %p778_p2 = scmp.lt.s32.totalorder %s605_s10, %s605_s10 }
  0x31   :  { %674 = vmatpush3.msra.mxu0 %v258_v15  ;;  %p774_p1 = scmp.ne.s32.totalorder %s605_s10, %s773_s18  ;;  %p779_p3 = scmp.lt.s32.totalorder %s773_s18, %s773_s18 }
  0x32   :  { %675 = vmatprep.subr.mxu0 %v802_v0 }
  0x33   :  { %676 = vmatpush3.msra.mxu0 %v257_v16  ;;  %p780_p4 = por %p779_p3, %p778_p2 }
  0x34   :  { %685 = vmatprep.subr.mxu0 %v802_v0 }
  0x35   :  { %p781_p5 = pnand %p780_p4, %p774_p1 }
  0xef   :  { %v166_v11 = vpop.f32.mrf.mxu0 }
  0xf0   :  { %v167_v12 = vadd.f32 %v614_v10, %v166_v11 }
  0xf1   :  { %v661_v13 = vpop.f32.mrf.mxu0 }
  0xf2   :  { %v170_v14 = vmax.f32 %v167_v12, 0.0 }
  0xf4   :  { %671 = vmatmul.mubr.msk.f32.vlgmr.msra.gmra.mxu1 %vm182_vm3, %v170_v14 }
  0xf5   :  { %682 = vmatprep.mubr.msk.f32.mxu1 %vm803_vm0, %v802_v0  ;;  %681 = vmatpush3.msra.mxu1 %v341_v22 }
  0xf6   :  { %692 = vmatprep.subr.mxu1 %v802_v0 }
 0x1b4   :  { %v252_v18 = vpop.f32.mrf.mxu1 }
 0x1b5   :  { %v253_v19 = vadd.f32 %v617_v17, %v252_v18 }
 0x1b6   :  { %v672_v20 = vpop.f32.mrf.mxu1 }
 0x1b7   :  { %v256_v21 = vmax.f32 %v253_v19, 0.0 }
 0x1b9   :  { %678 = vmatmul.mubr.msk.f32.vlgmr.msra.gmra.mxu0 %vm266_vm4, %v256_v21 }
 0x1ba   :  { %689 = vmatprep.mubr.msk.f32.mxu0 %vm803_vm0, %v802_v0  ;;  %686 = vmatpush3.msra.mxu0 %v425_v28 }
 0x1bb   :  { %687 = vmatprep.subr.mxu0 %v802_v0 }
 0x1bc   :  { %688 = vmatpush3.msra.mxu0 %v424_v29 }
 0x279   :  { %v336_v24 = vpop.f32.mrf.mxu0 }
 0x27a   :  { %v337_v25 = vadd.f32 %v619_v23, %v336_v24 }
 0x27b   :  { %v679_v26 = vpop.f32.mrf.mxu0 }
 0x27c   :  { %v340_v27 = vmax.f32 %v337_v25, 0.0 }
 0x27e   :  { %683 = vmatmul.mubr.msk.f32.vlgmr.msra.gmra.mxu1 %vm349_vm5, %v340_v27 }
 0x27f   :  { %700 = vmatprep.mubr.msk.f32.mxu1 %vm803_vm0, %v802_v0  ;;  %693 = vmatpush3.msra.mxu1 %v510_v30 }
 0x280   :  { %694 = vmatprep.subr.mxu1 %v802_v0 }
 0x281   :  { %695 = vmatpush3.msra.mxu1 %v509_v36 }
 0x282   :  { %696 = vmatprep.subr.mxu1 %v802_v0 }
 0x283   :  { %697 = vmatpush3.msra.mxu1 %v508_v37 }
 0x284   :  { %698 = vmatprep.subr.mxu1 %v802_v0 }
 0x285   :  { %699 = vmatpush3.msra.mxu1 %v507_v38 }
 0x33e   :  { %v419_v32 = vpop.f32.mrf.mxu1 }
 0x33f   :  { %v420_v33 = vadd.f32 %v621_v31, %v419_v32 }
 0x340   :  { %v684_v34 = vpop.f32.mrf.mxu1 }
 0x341   :  { %v423_v35 = vmax.f32 %v420_v33, 0.0 }
 0x343   :  { %690 = vmatmul.mubr.msk.f32.vlgmr.msra.gmra.mxu0 %vm266_vm4, %v423_v35 }
 0x403   :  { %v502_v40 = vpop.f32.mrf.mxu0 }
 0x404   :  { %v503_v41 = vadd.f32 %v623_v39, %v502_v40 }
 0x405   :  { %v691_v42 = vpop.f32.mrf.mxu0 }
 0x406   :  { %v506_v43 = vmax.f32 %v503_v41, 0.0 }
 0x408   :  { %701 = vmatmul.mubr.msk.f32.vlgmr.msra.gmra.mxu1 %vm182_vm3, %v506_v43 }
 0x4c8   :  { %v587_v45 = vpop.f32.mrf.mxu1 }
 0x4c9   :  { %v588_v46 = vadd.f32 %v625_v44, %v587_v45 }
 0x4ca   :  { %v702_v47 = vpop.f32.mrf.mxu1 }
 0x4cb   :  { %v627_v48 = vmul.f32 -1.442695, %v588_v46 }
 0x4cd   :  { %709 = vpow2.f32 %v627_v48 }
 0x4da   :  { %v710_v49 = vpop.eup %709 }
 0x4db   :  { %v594_v50 = vadd.f32 1.0, %v710_v49 }
 0x4dd   :  { %711 = vrcp.f32 %v594_v50 }
 0x4ea   :  { %v712_v51 = vpop.eup %711 }
 0x4eb   :  { %597 = vst.msk [vmem:[#allocation8] sm:$0xff] %vm92_vm2, %v712_v51 }
 0x4ec   :  { %784 = shalt.err (!%p781_p5)
}
 0x4ed   :  { %607 = dma.vmem_to_hbm [thread:$0]  %s605_s10, 128, %s998_s13, [#allocation4]  }
 0x4ee   :  { %797 = dma.done.wait [#allocation4], 128  }
 0x4ef   :  { %798 = vsyncadd [#allocation4], 4294967168 }
 0x4f0   :  { %611 = vsyncpa [#allocation3], 1 }
 0x4f1   :  { %612 = vsyncpa [#allocation6], 1 }
 0x4f2   :  { %613 = vsyncpa [#allocation4], 1 }

</bundles_post_ra>
